<compile_context>
chip_gen: v6e
topology: v6e:2x2x1
jax: 0.10.0
libtpu: 0.0.40
codegen_flags: <defaults>
</compile_context>

<pallas_src>
import functools

import jax
import jax.numpy as jnp
from jax.experimental import pallas as pl
from jax.experimental.pallas import tpu as pltpu


def _round_up(n: int, m: int) -> int:
    return ((n + m - 1) // m) * m


def _cdiv(a: int, b: int) -> int:
    return -(-a // b)


# ---------------------------------------------------------------------------
# Kernel
# ---------------------------------------------------------------------------
def critic_kernel(f1p, f2p, outp,
                  x_ref, w_in_ref, w2s_ref, w3_ref, b_ref, o_ref):
    # Packed biases [b1 | b2 | b3] along lanes; static, lane-aligned slices.
    b1 = b_ref[:, 0:f1p]
    b2 = b_ref[:, f1p:f1p + f2p]
    b3 = b_ref[:, f1p + f2p:f1p + f2p + outp]

    # Fused first stage: ONE block-diagonal matmul computes both state@W1
    # (lanes 0:f1p) and action@W2_a (lanes f1p:f1p+f2p).
    # bf16 MXU feed (cast here, input arrives f32), f32 accumulate.
    x = x_ref[...].astype(w_in_ref.dtype)
    h = jnp.dot(x, w_in_ref[...], preferred_element_type=jnp.float32)
    h1 = jnp.maximum(h[:, :f1p] + b1, 0.0)     # xs = relu(fcs1(state)), f32 epilogue
    a2 = h[:, f1p:]                             # action @ W2_a (no bias, no ReLU)

    # fc2(cat(xs, action)) == xs @ W2_s + action @ W2_a + b2   (no in-kernel concat)
    h2 = jnp.dot(h1.astype(w2s_ref.dtype), w2s_ref[...],
                 preferred_element_type=jnp.float32) + a2 + b2
    h2 = jnp.maximum(h2, 0.0)

    # fc3 linear head; output padded to 128 lanes for dense (unmasked) stores.
    q = jnp.dot(h2.astype(w3_ref.dtype), w3_ref[...],
                preferred_element_type=jnp.float32)
    o_ref[...] = (q + b3).astype(o_ref.dtype)


# ---------------------------------------------------------------------------
# Parameter init (mirrors the PyTorch Critic) and kernel-layout preparation
# ---------------------------------------------------------------------------
def init_critic_params(key, state_size, action_size, fcs1_units=400, fc2_units=300):
    """f32 params in (in, out) layout, mirroring Critic.reset_parameters.

    NOTE: hidden_init uses weight.size()[0] (== out_features) as 'fan_in' —
    a quirk of the reference code that we reproduce exactly. Biases keep the
    PyTorch nn.Linear default U(-1/sqrt(in_features), 1/sqrt(in_features)).
    """
    k1, k2, k3, kb1, kb2, kb3 = jax.random.split(key, 6)

    lim1 = 1.0 / jnp.sqrt(jnp.float32(fcs1_units))
    lim2 = 1.0 / jnp.sqrt(jnp.float32(fc2_units))
    lim3 = 0.003

    w1 = jax.random.uniform(k1, (state_size, fcs1_units), jnp.float32, -lim1, lim1)
    w2 = jax.random.uniform(k2, (fcs1_units + action_size, fc2_units),
                            jnp.float32, -lim2, lim2)
    w3 = jax.random.uniform(k3, (fc2_units, 1), jnp.float32, -lim3, lim3)

    bl1 = 1.0 / jnp.sqrt(jnp.float32(state_size))
    bl2 = 1.0 / jnp.sqrt(jnp.float32(fcs1_units + action_size))
    bl3 = 1.0 / jnp.sqrt(jnp.float32(fc2_units))
    b1 = jax.random.uniform(kb1, (1, fcs1_units), jnp.float32, -bl1, bl1)
    b2 = jax.random.uniform(kb2, (1, fc2_units), jnp.float32, -bl2, bl2)
    b3 = jax.random.uniform(kb3, (1, 1), jnp.float32, -bl3, bl3)

    return {"w1": w1, "b1": b1, "w2": w2, "b2": b2, "w3": w3, "b3": b3}


def prepare_critic_params(params, *, compute_dtype=jnp.bfloat16):
    """One-time layout prep.

    * W2 split row-wise into W2_s (acts on xs) and W2_a (acts on action).
    * W1 and W2_a packed into one block-diagonal (SAP, F1P+F2P) weight so the
      first stage is a single lane-dense MXU pass over packed [state|action]
      (SAP = round_up(state_size+action_size, 128)).
    * Feature dims zero-padded to lane multiples, weights bf16, biases packed
      into one lane-aligned f32 vector.
    """
    S, f1 = params["w1"].shape
    f2 = params["w2"].shape[1]
    A = params["w2"].shape[0] - f1
    out = params["w3"].shape[1]

    f1p = _round_up(f1, 128)       # 400 -> 512
    f2p = _round_up(f2, 128)       # 300 -> 384
    outp = _round_up(out, 128)     # 1   -> 128
    sap = _round_up(S + A, 128)    # 32+8 -> 128

    w2_s = params["w2"][:f1, :]
    w2_a = params["w2"][f1:, :]

    w_in = jnp.zeros((sap, f1p + f2p), jnp.float32)
    w_in = w_in.at[:S, :f1].set(params["w1"])           # top-left block: W1
    w_in = w_in.at[S:S + A, f1p:f1p + f2].set(w2_a)     # bottom-right block: W2_a
    w_in = w_in.astype(compute_dtype)

    w2_s = jnp.pad(w2_s, ((0, f1p - f1), (0, f2p - f2))).astype(compute_dtype)
    w3 = jnp.pad(params["w3"], ((0, f2p - f2), (0, outp - out))).astype(compute_dtype)

    b = jnp.concatenate(
        [jnp.pad(params["b1"], ((0, 0), (0, f1p - f1))),
         jnp.pad(params["b2"], ((0, 0), (0, f2p - f2))),
         jnp.pad(params["b3"], ((0, 0), (0, outp - out)))],
        axis=1).astype(jnp.float32)

    return {"w_in": w_in, "w2_s": w2_s, "w3": w3, "b": b}


# ---------------------------------------------------------------------------
# Batch tiling
# ---------------------------------------------------------------------------
def _batch_tiling(batch, block_b, *, megacore_min_split=256):
    """Pick (tile_rows, padded_batch, n_steps) for the batch grid axis.

    * tile is a multiple of 8 (BlockSpec (8,128) legality).
    * number of steps is kept even when > 1, and a single mega-tile >= 256 rows
      is split in two, so the "parallel" batch axis shards across both of v7x's
      TensorCores; on v5e/v6e the extra ~0.35 us step is negligible.
    """
    if block_b <= 0 or block_b % 8 != 0:
        raise ValueError("block_b must be a positive multiple of 8")
    b8 = _round_up(batch, 8)
    n = _cdiv(b8, block_b)
    if n > 1:
        n = 2 * _cdiv(n, 2)                       # even #steps -> balanced on v7x
    tb = _round_up(_cdiv(b8, n), 8)
    if n == 1 and tb >= megacore_min_split:       # don't collapse to grid=(1,)
        n, tb = 2, _round_up(_cdiv(tb, 2), 8)
    return tb, n * tb, n


# ---------------------------------------------------------------------------
# Forward wrapper
# ---------------------------------------------------------------------------
def critic_forward(state, action, kp, *, block_b=512):
    """state: (B, state_size) f32; action: (B, action_size) f32; kp: prepared params.

    block_b: max rows per grid step.  512 is a good default on v6e/v7x
    (everything stays well under VMEM limits); sweep 128-256 on v5e, where the
    f32 h1/h2 staging grows with the tile and it has a single vector-store slot.
    """
    B, S = state.shape
    A = action.shape[1]
    SAP = kp["w_in"].shape[0]                 # padded [state|action] width
    F2P = kp["w2_s"].shape[1]
    F1P = kp["w_in"].shape[1] - F2P
    OUTP = kp["w3"].shape[1]

    TB, BP, n_steps = _batch_tiling(B, block_b)

    # One lane-dense packed input [state | action | 0-pad].  Kept f32; the bf16
    # cast happens inside the kernel (saves a wrapper-side convert fusion).
    x = jnp.concatenate([state, action], axis=1)
    x_p = jnp.pad(x, ((0, BP - B), (0, SAP - (S + A))))

    kernel = functools.partial(critic_kernel, F1P, F2P, OUTP)

    flops = 2 * BP * (SAP * (F1P + F2P) + F1P * F2P + F2P * OUTP)
    bytes_accessed = (
        x_p.size * 4
        + (kp["w_in"].size + kp["w2_s"].size + kp["w3"].size)
        * kp["w_in"].dtype.itemsize
        + kp["b"].size * 4
        + BP * OUTP * 4
    )

    out = pl.pallas_call(
        kernel,
        out_shape=jax.ShapeDtypeStruct((BP, OUTP), jnp.float32),
        grid_spec=pltpu.PrefetchScalarGridSpec(
            num_scalar_prefetch=0,
            grid=(n_steps,),
            in_specs=[
                pl.BlockSpec((TB, SAP), lambda i: (i, 0)),              # packed [state|action] tile
                pl.BlockSpec((SAP, F1P + F2P), lambda i: (0, 0)),       # fused W1/W2_a (VMEM resident)
                pl.BlockSpec((F1P, F2P), lambda i: (0, 0)),             # W2_s (resident)
                pl.BlockSpec((F2P, OUTP), lambda i: (0, 0)),            # W3 (resident)
                pl.BlockSpec((1, F1P + F2P + OUTP), lambda i: (0, 0)),  # packed biases
            ],
            out_specs=pl.BlockSpec((TB, OUTP), lambda i: (i, 0)),
        ),
        compiler_params=pltpu.CompilerParams(
            dimension_semantics=("parallel",)),
        cost_estimate=pl.CostEstimate(
            flops=flops, transcendentals=0, bytes_accessed=bytes_accessed),
    )(x_p, kp["w_in"], kp["w2_s"], kp["w3"], kp["b"])

    # Drop batch padding and the 127 zero lanes of the padded scalar head.
    return out[:B, :1]


# ---------------------------------------------------------------------------
# Pure-JAX references
# ---------------------------------------------------------------------------
def critic_forward_ref(state, action, params):
    """f32 reference of the PyTorch forward."""
    xs = jnp.maximum(state @ params["w1"] + params["b1"], 0.0)
    x = jnp.concatenate([xs, action], axis=1)
    x = jnp.maximum(x @ params["w2"] + params["b2"], 0.0)
    return x @ params["w3"] + params["b3"]


def critic_forward_ref_bf16(state, action, params):
    """Reference with the same bf16-feed / f32-accumulate casts as the kernel."""
    cd = jnp.bfloat16
    f1 = params["w1"].shape[1]
    h1 = jnp.dot(state.astype(cd), params["w1"].astype(cd),
                 preferred_element_type=jnp.float32) + params["b1"]
    h1 = jnp.maximum(h1, 0.0)
    h2 = (jnp.dot(h1.astype(cd), params["w2"][:f1].astype(cd),
                  preferred_element_type=jnp.float32)
          + jnp.dot(action.astype(cd), params["w2"][f1:].astype(cd),
                    preferred_element_type=jnp.float32)
          + params["b2"])
    h2 = jnp.maximum(h2, 0.0)
    return jnp.dot(h2.astype(cd), params["w3"].astype(cd),
                   preferred_element_type=jnp.float32) + params["b3"]


if __name__ == "__main__":
    key = jax.random.PRNGKey(0)
    k_params, k_data = jax.random.split(key)

    state_size, action_size = 32, 8
    fcs1_units, fc2_units = 400, 300

    params = init_critic_params(k_params, state_size, action_size,
                                fcs1_units=fcs1_units, fc2_units=fc2_units)
    kparams = prepare_critic_params(params)   # one-time bf16 / padded / fused layout

    fwd = jax.jit(critic_forward)

    # batch=8: single small tile; batch=256: single-tile case split into two even
    # tiles (v7x megacore path); batch=600: padded, multi-step grid.
    for batch in (8, 256, 600):
        ks, ka = jax.random.split(jax.random.fold_in(k_data, batch))
        state = jax.random.normal(ks, (batch, state_size), jnp.float32)
        action = jax.random.normal(ka, (batch, action_size), jnp.float32)

        q = fwd(state, action, kparams)
        jax.block_until_ready(q)
        assert q.shape == (batch, 1), q.shape

        # Tight check vs a reference using identical bf16-feed / f32-accum casts.
        ref_bf16 = critic_forward_ref_bf16(state, action, params)
        assert jnp.allclose(q, ref_bf16, atol=1e-3, rtol=1e-3), \
            f"batch={batch}: mismatch vs bf16-matched reference"

        # Looser check vs the pure-f32 PyTorch-equivalent math (bf16 rounding only).
        ref_f32 = critic_forward_ref(state, action, params)
        assert jnp.allclose(q, ref_f32, atol=5e-3, rtol=5e-2), \
            f"batch={batch}: mismatch vs f32 reference"

    print("KERNEL_OK")
</pallas_src>

<mosaic_0001>
module attributes {stable_mosaic.version = 11 : i64} {
  func.func @critic_kernel(%arg0: i32, %arg1: memref<8x128xf32, #tpu.memory_space<vmem>>, %arg2: memref<128x896xbf16, #tpu.memory_space<vmem>>, %arg3: memref<512x384xbf16, #tpu.memory_space<vmem>>, %arg4: memref<384x128xbf16, #tpu.memory_space<vmem>>, %arg5: memref<1x1024xf32, #tpu.memory_space<vmem>>, %arg6: memref<8x128xf32, #tpu.memory_space<vmem>>) attributes {dimension_semantics = [#tpu.dimension_semantics<parallel>], iteration_bounds = array<i64: 1>, scalar_prefetch = 0 : i64, scratch_operands = 0 : i64, tpu.core_type = #tpu.core_type<tc>, window_params = [{transform_indices = @transform_0, window_bounds = array<i64: 8, 128>}, {pipeline_mode = #tpu.pipeline_mode<synchronous>, transform_indices = @transform_1, window_bounds = array<i64: 128, 896>}, {pipeline_mode = #tpu.pipeline_mode<synchronous>, transform_indices = @transform_2, window_bounds = array<i64: 512, 384>}, {pipeline_mode = #tpu.pipeline_mode<synchronous>, transform_indices = @transform_3, window_bounds = array<i64: 384, 128>}, {pipeline_mode = #tpu.pipeline_mode<synchronous>, transform_indices = @transform_4, window_bounds = array<i64: 1, 1024>}, {transform_indices = @transform_5, window_bounds = array<i64: 8, 128>}]} {
    %c0 = arith.constant 0 : index
    %c0_0 = arith.constant 0 : index
    %0 = vector.load %arg5[%c0, %c0_0] : memref<1x1024xf32, #tpu.memory_space<vmem>>, vector<1x512xf32>
    %c0_1 = arith.constant 0 : index
    %c512 = arith.constant 512 : index
    %1 = vector.load %arg5[%c0_1, %c512] : memref<1x1024xf32, #tpu.memory_space<vmem>>, vector<1x384xf32>
    %c0_2 = arith.constant 0 : index
    %c896 = arith.constant 896 : index
    %2 = vector.load %arg5[%c0_2, %c896] : memref<1x1024xf32, #tpu.memory_space<vmem>>, vector<1x128xf32>
    %c0_3 = arith.constant 0 : index
    %c0_4 = arith.constant 0 : index
    %3 = vector.load %arg1[%c0_3, %c0_4] : memref<8x128xf32, #tpu.memory_space<vmem>>, vector<8x128xf32>
    %4 = arith.truncf %3 : vector<8x128xf32> to vector<8x128xbf16>
    %c0_5 = arith.constant 0 : index
    %c0_6 = arith.constant 0 : index
    %5 = vector.load %arg2[%c0_5, %c0_6] : memref<128x896xbf16, #tpu.memory_space<vmem>>, vector<128x896xbf16>
    %cst = arith.constant dense<0.000000e+00> : vector<8x896xf32>
    %6 = tpu.matmul %4, %5, %cst {dimension_numbers = #tpu.dot_dimension_numbers<[1], [0], [0], [1], [0, 0, 1, 1], [], []>} : vector<8x128xbf16>, vector<128x896xbf16>, vector<8x896xf32> -> vector<8x896xf32>
    %7 = vector.extract_strided_slice %6 {offsets = [0, 0], sizes = [8, 512], strides = [1, 1]} : vector<8x896xf32> to vector<8x512xf32>
    %8 = vector.broadcast %0 : vector<1x512xf32> to vector<8x512xf32>
    %9 = arith.addf %7, %8 : vector<8x512xf32>
    %cst_7 = arith.constant 0.000000e+00 : f32
    %10 = vector.broadcast %cst_7 : f32 to vector<8x512xf32>
    %11 = arith.maximumf %9, %10 : vector<8x512xf32>
    %12 = vector.extract_strided_slice %6 {offsets = [0, 512], sizes = [8, 384], strides = [1, 1]} : vector<8x896xf32> to vector<8x384xf32>
    %13 = arith.truncf %11 : vector<8x512xf32> to vector<8x512xbf16>
    %c0_8 = arith.constant 0 : index
    %c0_9 = arith.constant 0 : index
    %14 = vector.load %arg3[%c0_8, %c0_9] : memref<512x384xbf16, #tpu.memory_space<vmem>>, vector<512x384xbf16>
    %cst_10 = arith.constant dense<0.000000e+00> : vector<8x384xf32>
    %15 = tpu.matmul %13, %14, %cst_10 {dimension_numbers = #tpu.dot_dimension_numbers<[1], [0], [0], [1], [0, 0, 1, 1], [], []>} : vector<8x512xbf16>, vector<512x384xbf16>, vector<8x384xf32> -> vector<8x384xf32>
    %16 = arith.addf %15, %12 : vector<8x384xf32>
    %17 = vector.broadcast %1 : vector<1x384xf32> to vector<8x384xf32>
    %18 = arith.addf %16, %17 : vector<8x384xf32>
    %cst_11 = arith.constant 0.000000e+00 : f32
    %19 = vector.broadcast %cst_11 : f32 to vector<8x384xf32>
    %20 = arith.maximumf %18, %19 : vector<8x384xf32>
    %21 = arith.truncf %20 : vector<8x384xf32> to vector<8x384xbf16>
    %c0_12 = arith.constant 0 : index
    %c0_13 = arith.constant 0 : index
    %22 = vector.load %arg4[%c0_12, %c0_13] : memref<384x128xbf16, #tpu.memory_space<vmem>>, vector<384x128xbf16>
    %cst_14 = arith.constant dense<0.000000e+00> : vector<8x128xf32>
    %23 = tpu.matmul %21, %22, %cst_14 {dimension_numbers = #tpu.dot_dimension_numbers<[1], [0], [0], [1], [0, 0, 1, 1], [], []>} : vector<8x384xbf16>, vector<384x128xbf16>, vector<8x128xf32> -> vector<8x128xf32>
    %24 = vector.broadcast %2 : vector<1x128xf32> to vector<8x128xf32>
    %25 = arith.addf %23, %24 : vector<8x128xf32>
    %c0_15 = arith.constant 0 : index
    %c0_16 = arith.constant 0 : index
    %26 = vector.load %arg6[%c0_15, %c0_16] : memref<8x128xf32, #tpu.memory_space<vmem>>, vector<8x128xf32>
    tpu.vector_store %arg6[%c0_15, %c0_16], %25 {strides = array<i32>} : memref<8x128xf32, #tpu.memory_space<vmem>>, vector<8x128xf32>,
    return
  }
  func.func @transform_0(%arg0: i32) -> (i32, i32) {
    %c0_i32 = arith.constant 0 : i32
    %c0_i32_0 = arith.constant 0 : i32
    return %arg0, %c0_i32 : i32, i32
  }
  func.func @transform_1(%arg0: i32) -> (i32, i32) {
    %c0_i32 = arith.constant 0 : i32
    %c0_i32_0 = arith.constant 0 : i32
    %c0_i32_1 = arith.constant 0 : i32
    return %c0_i32, %c0_i32_0 : i32, i32
  }
  func.func @transform_2(%arg0: i32) -> (i32, i32) {
    %c0_i32 = arith.constant 0 : i32
    %c0_i32_0 = arith.constant 0 : i32
    %c0_i32_1 = arith.constant 0 : i32
    return %c0_i32, %c0_i32_0 : i32, i32
  }
  func.func @transform_3(%arg0: i32) -> (i32, i32) {
    %c0_i32 = arith.constant 0 : i32
    %c0_i32_0 = arith.constant 0 : i32
    %c0_i32_1 = arith.constant 0 : i32
    return %c0_i32, %c0_i32_0 : i32, i32
  }
  func.func @transform_4(%arg0: i32) -> (i32, i32) {
    %c0_i32 = arith.constant 0 : i32
    %c0_i32_0 = arith.constant 0 : i32
    %c0_i32_1 = arith.constant 0 : i32
    return %c0_i32, %c0_i32_0 : i32, i32
  }
  func.func @transform_5(%arg0: i32) -> (i32, i32) {
    %c0_i32 = arith.constant 0 : i32
    %c0_i32_0 = arith.constant 0 : i32
    return %arg0, %c0_i32 : i32, i32
  }
}

</mosaic_0001>

<bundles_post_ra>
// kernel: critic_forward.1
= control target key start
LH: loop header
LB: loop body
LE: loop exit
PB: predicated region body
PF: predicated region fallthrough
CT: control target
= control target key end

     0   :  { %10 = vsyncpa [#allocation3], 0  ;;  %s2466_s0 = inlined_call_operand.vmem [shape: f32[8,128], index: 0, kind: input, shape index: {}]   ;;  %s2467_s1 = inlined_call_operand.hbm [shape: bf16[128,896], index: 1, kind: input, shape index: {}]   ;;  %s2468_s2 = inlined_call_operand.hbm [shape: bf16[512,384], index: 2, kind: input, shape index: {}]   ;;  %s2469_s3 = inlined_call_operand.hbm [shape: bf16[384,128], index: 3, kind: input, shape index: {}]   ;;  %s2470_s4 = inlined_call_operand.vmem [shape: f32[1,1024], index: 4, kind: input, shape index: {}]   ;;  %s2471_s5 = inlined_call_operand.vmem [shape: f32[8,128], index: 5, kind: output, shape index: {}]  }
   0x1   :  { %11 = vsyncpa [#allocation5], 0  ;;  %s2336_s18 = smov [#allocation4]  }
   0x2   :  { %s31_s19 = sshll.u32 %s2336_s18, 4  ;;  %s32_s19 = int_to_ptr.vmem [resolvable:$true] %s31_s19 }
   0x3   :  { %s2280_s20 = scalar_lea.vmem %s32_s19, 12288  ;;  %p2285_p1 = scmp.lt.s32.totalorder %s32_s19, %s32_s19 }
   0x4   :  { %p2281_p0 = scmp.ne.s32.totalorder %s32_s19, %s2280_s20  ;;  %p2286_p2 = scmp.lt.s32.totalorder %s2280_s20, %s2280_s20 }
   0x6   :  { %p2287_p3 = por %p2286_p2, %p2285_p1 }
   0x8   :  { %p2288_p4 = pnand %p2287_p3, %p2281_p0 }
   0xa   :  { %2291 = shalt.err (!%p2288_p4)
}
   0xb   :  { %s2337_s21 = smov 192   ;;  %s2338_s22 = smov 12  }
   0xc   :  { %37 = dma.hbm_to_vmem [thread:$0]  %s2468_s2, 12288, %s32_s19, [#allocation5], %s2337_s21, %s2337_s21, %s2338_s22  }
   0xd   :  { %s2339_s25 = smov [#allocation2]  }
   0xe   :  { %s19_s26 = sshll.u32 %s2339_s25, 4  ;;  %s20_s26 = int_to_ptr.vmem [resolvable:$true] %s19_s26 }
   0xf   :  { %s2300_s27 = scalar_lea.vmem %s20_s26, 7168  ;;  %p2305_p6 = scmp.lt.s32.totalorder %s20_s26, %s20_s26 }
  0x10   :  { %p2301_p5 = scmp.ne.s32.totalorder %s20_s26, %s2300_s27  ;;  %p2306_p7 = scmp.lt.s32.totalorder %s2300_s27, %s2300_s27 }
  0x12   :  { %p2307_p8 = por %p2306_p7, %p2305_p6 }
  0x14   :  { %p2308_p9 = pnand %p2307_p8, %p2301_p5 }
  0x16   :  { %2311 = shalt.err (!%p2308_p9)
}
  0x17   :  { %s2340_s28 = smov 448   ;;  %s2341_s29 = smov 28  }
  0x18   :  { %25 = dma.hbm_to_vmem [thread:$0]  %s2467_s1, 7168, %s20_s26, [#allocation3], %s2340_s28, %s2340_s28, %s2341_s29  }
  0x19   :  { %s2342_s7 = smov [#allocation6]  }
  0x1a   :  { %s43_s8 = sshll.u32 %s2342_s7, 4  ;;  %s44_s8 = int_to_ptr.vmem [resolvable:$true] %s43_s8 }
  0x1b   :  { %s2320_s2 = scalar_lea.vmem %s44_s8, 3072  ;;  %p2325_p11 = scmp.lt.s32.totalorder %s44_s8, %s44_s8 }
  0x1c   :  { %p2321_p10 = scmp.ne.s32.totalorder %s44_s8, %s2320_s2  ;;  %p2326_p12 = scmp.lt.s32.totalorder %s2320_s2, %s2320_s2 }
  0x1e   :  { %p2327_p13 = por %p2326_p12, %p2325_p11 }
  0x20   :  { %p2328_p0 = pnand %p2327_p13, %p2321_p10 }
  0x22   :  { %2331 = shalt.err (!%p2328_p0)
}
  0x23   :  { %s2343_s9 = smov 64   ;;  %s2344_s10 = smov 4  }
  0x24   :  { %49 = dma.hbm_to_vmem [thread:$0]  %s2469_s3, 3072, %s44_s8, [#allocation5], %s2343_s9, %s2343_s9, %s2344_s10  }
  0x25   :  { %2332 = dma.done.wait [#allocation3], 7168  }
  0x26   :  { %2333 = vsyncadd [#allocation3], 4294960128 }
  0x27   :  { %2334 = dma.done.wait [#allocation5], 15360  }
  0x28   :  { %2335 = vsyncadd [#allocation5], 4294951936  ;;  %v2345_v0 = vmov 0   ;;  %v2040_v1 = vld [vmem:[#allocation2 + $0x18c] ss:$28 sps:$4 sm:$0xff]   ;;  %v65_v33 = vld [vmem:[%s2466_s0] sm:$0xff] }
  0x29   :  { %451 = vmatprep.mubr.bf16.mxu0 %v2345_v0  ;;  %492 = vmatprep.mubr.bf16.mxu1 %v2345_v0  ;;  %v2042_v2 = vld [vmem:[#allocation2 + $0x194] ss:$28 sps:$4 sm:$0xff]   ;;  %v2044_v3 = vld [vmem:[#allocation2 + $0x188] ss:$28 sps:$4 sm:$0xff]   ;;  %v2048_v6 = vld [vmem:[#allocation2 + $0x15c] ss:$28 sps:$4 sm:$0xff]   ;;  %v2392_v35 = vpack.c.bf16 %v65_v33, %v65_v33 }
  0x2a   :  { %419 = vmatprep.subr.bf16.mxu0 %v2040_v1  ;;  %v2045_v4 = vld [vmem:[#allocation2 + $0x190] ss:$28 sps:$4 sm:$0xff]   ;;  %460 = vmatprep.subr.bf16.mxu1 %v2042_v2  ;;  %v2051_v8 = vld [vmem:[#allocation2 + $0x158] ss:$28 sps:$4 sm:$0xff]   ;;  %v2054_v10 = vld [vmem:[#allocation2 + $0x124] ss:$28 sps:$4 sm:$0xff]  }
  0x2b   :  { %v2046_v5 = vld [vmem:[#allocation2 + $0x154] ss:$28 sps:$4 sm:$0xff]   ;;  %420 = vmatpush1.bf16.msra.mxu0 %v2044_v3  ;;  %461 = vmatpush1.bf16.msra.mxu1 %v2045_v4  ;;  %v2052_v9 = vld [vmem:[#allocation2 + $0x11c] ss:$28 sps:$4 sm:$0xff]   ;;  %v2058_v13 = vld [vmem:[#allocation2 + $0xe4] ss:$28 sps:$4 sm:$0xff]  }
  0x2c   :  { %v2050_v7 = vld [vmem:[#allocation2 + $0x150] ss:$28 sps:$4 sm:$0xff]   ;;  %421 = vmatprep.subr.bf16.mxu0 %v2046_v5  ;;  %462 = vmatprep.subr.bf16.mxu1 %v2048_v6  ;;  %v2056_v11 = vld [vmem:[#allocation2 + $0x118] ss:$28 sps:$4 sm:$0xff]   ;;  %v2057_v12 = vld [vmem:[#allocation2 + $0x120] ss:$28 sps:$4 sm:$0xff]  }
  0x2d   :  { %v2060_v14 = vld [vmem:[#allocation2 + $0xec] ss:$28 sps:$4 sm:$0xff]   ;;  %v2062_v15 = vld [vmem:[#allocation2 + $0xe0] ss:$28 sps:$4 sm:$0xff]   ;;  %v2066_v18 = vld [vmem:[#allocation2 + $0xb4] ss:$28 sps:$4 sm:$0xff]  }
  0x2e   :  { %v2063_v16 = vld [vmem:[#allocation2 + $0xe8] ss:$28 sps:$4 sm:$0xff]   ;;  %v2069_v20 = vld [vmem:[#allocation2 + $0xb0] ss:$28 sps:$4 sm:$0xff]   ;;  %v2072_v22 = vld [vmem:[#allocation2 + $0x7c] ss:$28 sps:$4 sm:$0xff]  }
  0x2f   :  { %422 = vmatpush1.bf16.msra.mxu0 %v2050_v7  ;;  %463 = vmatpush1.bf16.msra.mxu1 %v2051_v8  ;;  %v2064_v17 = vld [vmem:[#allocation2 + $0xac] ss:$28 sps:$4 sm:$0xff]   ;;  %v2070_v21 = vld [vmem:[#allocation2 + $0x74] ss:$28 sps:$4 sm:$0xff]   ;;  %v2076_v25 = vld [vmem:[#allocation2 + $0x3c] ss:$28 sps:$4 sm:$0xff]  }
  0x30   :  { %423 = vmatprep.subr.bf16.mxu0 %v2052_v9  ;;  %464 = vmatprep.subr.bf16.mxu1 %v2054_v10  ;;  %v2068_v19 = vld [vmem:[#allocation2 + $0xa8] ss:$28 sps:$4 sm:$0xff]   ;;  %v2074_v23 = vld [vmem:[#allocation2 + $0x70] ss:$28 sps:$4 sm:$0xff]   ;;  %v2075_v24 = vld [vmem:[#allocation2 + $0x78] ss:$28 sps:$4 sm:$0xff]  }
  0x31   :  { %v2078_v26 = vld [vmem:[#allocation2 + $0x44] ss:$28 sps:$4 sm:$0xff]   ;;  %v2080_v27 = vld [vmem:[#allocation2 + $0x38] ss:$28 sps:$4 sm:$0xff]   ;;  %v2084_v30 = vld [vmem:[#allocation2 + $0xc] ss:$28 sps:$4 sm:$0xff]  }
  0x32   :  { %v2081_v28 = vld [vmem:[#allocation2 + $0x40] ss:$28 sps:$4 sm:$0xff]   ;;  %v2087_v32 = vld [vmem:[#allocation2 + $0x8] ss:$28 sps:$4 sm:$0xff]   ;;  %v2088_v36 = vld [vmem:[#allocation2 + $0x198] ss:$28 sps:$4 sm:$0xff]  }
  0x33   :  { %424 = vmatpush1.bf16.msra.mxu0 %v2056_v11  ;;  %465 = vmatpush1.bf16.msra.mxu1 %v2057_v12  ;;  %v2082_v29 = vld [vmem:[#allocation2 + $0x4] ss:$28 sps:$4 sm:$0xff]   ;;  %v2090_v34 = vld [vmem:[#allocation2 + $0x19c] ss:$28 sps:$4 sm:$0xff]   ;;  %v2346_v38 = vmov 0.0   ;;  %vm2347_vm0 = vmmov 0  }
  0x34   :  { %425 = vmatprep.subr.bf16.mxu0 %v2058_v13  ;;  %466 = vmatprep.subr.bf16.mxu1 %v2060_v14  ;;  %v2086_v31 = vld [vmem:[#allocation2] ss:$28 sps:$4 sm:$0xff]   ;;  %v2095_v41 = vld [vmem:[#allocation2 + $0x168] ss:$28 sps:$4 sm:$0xff]   ;;  %v2099_v44 = vld [vmem:[#allocation2 + $0x130] ss:$28 sps:$4 sm:$0xff]  }
  0x35   :  { %v2091_v37 = vld [vmem:[#allocation2 + $0x1a0] ss:$28 sps:$4 sm:$0xff]   ;;  %v2098_v42 = vld [vmem:[#allocation2 + $0x12c] ss:$28 sps:$4 sm:$0xff]   ;;  %v2102_v45 = vld [vmem:[#allocation2 + $0xf4] ss:$28 sps:$4 sm:$0xff]  }
  0x36   :  { %v2094_v39 = vld [vmem:[#allocation2 + $0x164] ss:$28 sps:$4 sm:$0xff]   ;;  %v2100_v46 = vld [vmem:[#allocation2 + $0xf0] ss:$28 sps:$4 sm:$0xff]   ;;  %v2103_v47 = vld [vmem:[#allocation2 + $0xf8] ss:$28 sps:$4 sm:$0xff]  }
  0x37   :  { %426 = vmatpush1.bf16.msra.mxu0 %v2062_v15  ;;  %467 = vmatpush1.bf16.msra.mxu1 %v2063_v16  ;;  %v2092_v40 = vld [vmem:[#allocation2 + $0x160] ss:$28 sps:$4 sm:$0xff]   ;;  %v2096_v43 = vld [vmem:[#allocation2 + $0x128] ss:$28 sps:$4 sm:$0xff]   ;;  %v2104_v49 = vld [vmem:[#allocation2 + $0xb8] ss:$28 sps:$4 sm:$0xff]  }
  0x38   :  { %427 = vmatprep.subr.bf16.mxu0 %v2064_v17  ;;  %468 = vmatprep.subr.bf16.mxu1 %v2066_v18  ;;  %v2106_v48 = vld [vmem:[#allocation2 + $0xbc] ss:$28 sps:$4 sm:$0xff]   ;;  %v2110_v51 = vld [vmem:[#allocation2 + $0x84] ss:$28 sps:$4 sm:$0xff]   ;;  %v2114_v54 = vld [vmem:[#allocation2 + $0x4c] ss:$28 sps:$4 sm:$0xff]  }
  0x39   :  { %v2107_v50 = vld [vmem:[#allocation2 + $0xc0] ss:$28 sps:$4 sm:$0xff]   ;;  %v2111_v53 = vld [vmem:[#allocation2 + $0x88] ss:$28 sps:$4 sm:$0xff]   ;;  %v2115_v56 = vld [vmem:[#allocation2 + $0x50] ss:$28 sps:$4 sm:$0xff]  }
  0x3a   :  { %v2108_v52 = vld [vmem:[#allocation2 + $0x80] ss:$28 sps:$4 sm:$0xff]   ;;  %v2112_v55 = vld [vmem:[#allocation2 + $0x48] ss:$28 sps:$4 sm:$0xff]   ;;  %v2118_v57 = vld [vmem:[#allocation2 + $0x14] ss:$28 sps:$4 sm:$0xff]  }
  0x3b   :  { %428 = vmatpush1.bf16.msra.mxu0 %v2068_v19  ;;  %469 = vmatpush1.bf16.msra.mxu1 %v2069_v20  ;;  %v2116_v58 = vld [vmem:[#allocation2 + $0x10] ss:$28 sps:$4 sm:$0xff]   ;;  %v2119_v59 = vld [vmem:[#allocation2 + $0x18] ss:$28 sps:$4 sm:$0xff]   ;;  %v2134_v4 = vld [vmem:[#allocation4 + $0x7c] ss:$12 sps:$4 sm:$0xff]  }
  0x3c   :  { %429 = vmatprep.subr.bf16.mxu0 %v2070_v21  ;;  %470 = vmatprep.subr.bf16.mxu1 %v2072_v22  ;;  %v2122_v60 = vld [vmem:[#allocation4 + $0xac] ss:$12 sps:$4 sm:$0xff]   ;;  %v2120_v62 = vld [vmem:[#allocation4 + $0xa8] ss:$12 sps:$4 sm:$0xff]   ;;  %v2126_v2 = vld [vmem:[#allocation4 + $0x90] ss:$12 sps:$4 sm:$0xff]  }
  0x3d   :  { %v2125_v61 = vld [vmem:[#allocation4 + $0x22c] ss:$12 sps:$4 sm:$0xff]   ;;  %v2123_v63 = vld [vmem:[#allocation4 + $0x228] ss:$12 sps:$4 sm:$0xff]   ;;  %v2129_v3 = vld [vmem:[#allocation4 + $0x210] ss:$12 sps:$4 sm:$0xff]  }
  0x3e   :  { %v2131_v1 = vld [vmem:[#allocation4 + $0x214] ss:$12 sps:$4 sm:$0xff]   ;;  %v2137_v5 = vld [vmem:[#allocation4 + $0x1fc] ss:$12 sps:$4 sm:$0xff]   ;;  %v2132_v6 = vld [vmem:[#allocation4 + $0x78] ss:$12 sps:$4 sm:$0xff]  }
  0x3f   :  { %430 = vmatpush1.bf16.msra.mxu0 %v2074_v23  ;;  %471 = vmatpush1.bf16.msra.mxu1 %v2075_v24  ;;  %v2135_v7 = vld [vmem:[#allocation4 + $0x1f8] ss:$12 sps:$4 sm:$0xff]   ;;  %v2138_v10 = vld [vmem:[#allocation4 + $0x60] ss:$12 sps:$4 sm:$0xff]   ;;  %v2144_v14 = vld [vmem:[#allocation4 + $0x48] ss:$12 sps:$4 sm:$0xff]  }
  0x40   :  { %431 = vmatprep.subr.bf16.mxu0 %v2076_v25  ;;  %472 = vmatprep.subr.bf16.mxu1 %v2078_v26  ;;  %v2140_v8 = vld [vmem:[#allocation4 + $0x64] ss:$12 sps:$4 sm:$0xff]   ;;  %v2141_v11 = vld [vmem:[#allocation4 + $0x1e0] ss:$12 sps:$4 sm:$0xff]   ;;  %v2147_v15 = vld [vmem:[#allocation4 + $0x1c8] ss:$12 sps:$4 sm:$0xff]  }
  0x41   :  { %v2143_v9 = vld [vmem:[#allocation4 + $0x1e4] ss:$12 sps:$4 sm:$0xff]   ;;  %v2146_v12 = vld [vmem:[#allocation4 + $0x4c] ss:$12 sps:$4 sm:$0xff]   ;;  %v2152_v16 = vld [vmem:[#allocation4 + $0x34] ss:$12 sps:$4 sm:$0xff]  }
  0x42   :  { %v2149_v13 = vld [vmem:[#allocation4 + $0x1cc] ss:$12 sps:$4 sm:$0xff]   ;;  %v2155_v17 = vld [vmem:[#allocation4 + $0x1b4] ss:$12 sps:$4 sm:$0xff]   ;;  %v2150_v18 = vld [vmem:[#allocation4 + $0x30] ss:$12 sps:$4 sm:$0xff]  }
  0x43   :  { %432 = vmatpush1.bf16.msra.mxu0 %v2080_v27  ;;  %473 = vmatpush1.bf16.msra.mxu1 %v2081_v28  ;;  %v2153_v19 = vld [vmem:[#allocation4 + $0x1b0] ss:$12 sps:$4 sm:$0xff]   ;;  %v2156_v22 = vld [vmem:[#allocation4 + $0x18] ss:$12 sps:$4 sm:$0xff]   ;;  %v2162_v26 = vld [vmem:[#allocation4] ss:$12 sps:$4 sm:$0xff]  }
  0x44   :  { %433 = vmatprep.subr.bf16.mxu0 %v2082_v29  ;;  %474 = vmatprep.subr.bf16.mxu1 %v2084_v30  ;;  %v2158_v20 = vld [vmem:[#allocation4 + $0x1c] ss:$12 sps:$4 sm:$0xff]   ;;  %v2159_v23 = vld [vmem:[#allocation4 + $0x198] ss:$12 sps:$4 sm:$0xff]   ;;  %v2165_v27 = vld [vmem:[#allocation4 + $0x180] ss:$12 sps:$4 sm:$0xff]  }
  0x45   :  { %v2161_v21 = vld [vmem:[#allocation4 + $0x19c] ss:$12 sps:$4 sm:$0xff]   ;;  %v2164_v24 = vld [vmem:[#allocation4 + $0x4] ss:$12 sps:$4 sm:$0xff]   ;;  %v2170_v28 = vld [vmem:[#allocation4 + $0x16c] ss:$12 sps:$4 sm:$0xff]  }
  0x46   :  { %v2167_v25 = vld [vmem:[#allocation4 + $0x184] ss:$12 sps:$4 sm:$0xff]   ;;  %v2173_v29 = vld [vmem:[#allocation4 + $0x2ec] ss:$12 sps:$4 sm:$0xff]   ;;  %v2168_v30 = vld [vmem:[#allocation4 + $0x168] ss:$12 sps:$4 sm:$0xff]  }
  0x47   :  { %434 = vmatpush1.bf16.msra.mxu0 %v2086_v31  ;;  %475 = vmatpush1.bf16.msra.mxu1 %v2087_v32  ;;  %v2171_v31 = vld [vmem:[#allocation4 + $0x2e8] ss:$12 sps:$4 sm:$0xff]  }
  0x48   :  { %501 = vmatprep.subr.bf16.mxu0 %v2090_v34  ;;  %1988 = vmatprep.subr.bf16.mxu1 %v2346_v38  ;;  %v2176_v32 = vld [vmem:[#allocation4 + $0x154] ss:$12 sps:$4 sm:$0xff]   ;;  %v2174_v34 = vld [vmem:[#allocation4 + $0x150] ss:$12 sps:$4 sm:$0xff]  }
  0x49   :  { %v2179_v33 = vld [vmem:[#allocation4 + $0x2d4] ss:$12 sps:$4 sm:$0xff]  }
  0x4a   :  { %452 = vmatmul.mubr.bf16.vlgmr.msra.gmra.mxu0 %v2392_v35  ;;  %493 = vmatmul.mubr.bf16.vlgmr.msra.gmra.mxu1 %v2392_v35 }
  0x4b   :  { %502 = vmatpush1.bf16.msra.mxu0 %v2088_v36  ;;  %1989 = vmatpush3.bf16.msra.mxu1 %v2091_v37  ;;  %v2182_v36 = vld [vmem:[#allocation4 + $0x13c] ss:$12 sps:$4 sm:$0xff]  }
  0x4c   :  { %503 = vmatprep.subr.bf16.mxu0 %v2094_v39  ;;  %1990 = vmatprep.subr.bf16.mxu1 %v2346_v38  ;;  %v2185_v37 = vld [vmem:[#allocation4 + $0x2bc] ss:$12 sps:$4 sm:$0xff]   ;;  %v2180_v39 = vld [vmem:[#allocation4 + $0x138] ss:$12 sps:$4 sm:$0xff]  }
  0x4d   :  { %533 = vmatprep.mubr.bf16.mxu0 %v2345_v0  ;;  %2004 = vmatprep.mubr.msk.bf16.mxu1 %vm2347_vm0, %v2346_v38  ;;  %v2128_v0 = vld [vmem:[#allocation4 + $0x94] ss:$12 sps:$4 sm:$0xff]  }
  0x4f   :  { %504 = vmatpush1.bf16.msra.mxu0 %v2092_v40  ;;  %1991 = vmatpush3.bf16.msra.mxu1 %v2095_v41  ;;  %v2183_v40 = vld [vmem:[#allocation4 + $0x2b8] ss:$12 sps:$4 sm:$0xff]  }
  0x50   :  { %505 = vmatprep.subr.bf16.mxu0 %v2098_v42  ;;  %1992 = vmatprep.subr.bf16.mxu1 %v2346_v38  ;;  %v2188_v41 = vld [vmem:[#allocation4 + $0x124] ss:$12 sps:$4 sm:$0xff]  }
  0x51   :  { %v2191_v42 = vld [vmem:[#allocation4 + $0x2a4] ss:$12 sps:$4 sm:$0xff]  }
  0x53   :  { %506 = vmatpush1.bf16.msra.mxu0 %v2096_v43  ;;  %1993 = vmatpush3.bf16.msra.mxu1 %v2099_v44  ;;  %v2186_v43 = vld [vmem:[#allocation4 + $0x120] ss:$12 sps:$4 sm:$0xff]  }
  0x54   :  { %507 = vmatprep.subr.bf16.mxu0 %v2102_v45  ;;  %1994 = vmatprep.subr.bf16.mxu1 %v2346_v38  ;;  %v2189_v44 = vld [vmem:[#allocation4 + $0x2a0] ss:$12 sps:$4 sm:$0xff]  }
  0x55   :  { %v2194_v45 = vld [vmem:[#allocation4 + $0x10c] ss:$12 sps:$4 sm:$0xff]  }
  0x57   :  { %508 = vmatpush1.bf16.msra.mxu0 %v2100_v46  ;;  %1995 = vmatpush3.bf16.msra.mxu1 %v2103_v47  ;;  %v2197_v46 = vld [vmem:[#allocation4 + $0x28c] ss:$12 sps:$4 sm:$0xff]   ;;  %v2192_v47 = vld [vmem:[#allocation4 + $0x108] ss:$12 sps:$4 sm:$0xff]  }
  0x58   :  { %509 = vmatprep.subr.bf16.mxu0 %v2106_v48  ;;  %1996 = vmatprep.subr.bf16.mxu1 %v2346_v38  ;;  %v2195_v48 = vld [vmem:[#allocation4 + $0x288] ss:$12 sps:$4 sm:$0xff]  }
  0x5b   :  { %510 = vmatpush1.bf16.msra.mxu0 %v2104_v49  ;;  %1997 = vmatpush3.bf16.msra.mxu1 %v2107_v50  ;;  %v2200_v49 = vld [vmem:[#allocation4 + $0xf4] ss:$12 sps:$4 sm:$0xff]  }
  0x5c   :  { %511 = vmatprep.subr.bf16.mxu0 %v2110_v51  ;;  %1998 = vmatprep.subr.bf16.mxu1 %v2346_v38  ;;  %v2203_v50 = vld [vmem:[#allocation4 + $0x274] ss:$12 sps:$4 sm:$0xff]   ;;  %v2198_v51 = vld [vmem:[#allocation4 + $0xf0] ss:$12 sps:$4 sm:$0xff]  }
  0x5f   :  { %512 = vmatpush1.bf16.msra.mxu0 %v2108_v52  ;;  %1999 = vmatpush3.bf16.msra.mxu1 %v2111_v53  ;;  %v2201_v52 = vld [vmem:[#allocation4 + $0x270] ss:$12 sps:$4 sm:$0xff]  }
  0x60   :  { %513 = vmatprep.subr.bf16.mxu0 %v2114_v54  ;;  %2000 = vmatprep.subr.bf16.mxu1 %v2346_v38  ;;  %v2206_v53 = vld [vmem:[#allocation4 + $0xdc] ss:$12 sps:$4 sm:$0xff]  }
  0x61   :  { %v2209_v54 = vld [vmem:[#allocation4 + $0x25c] ss:$12 sps:$4 sm:$0xff]  }
  0x63   :  { %514 = vmatpush1.bf16.msra.mxu0 %v2112_v55  ;;  %2001 = vmatpush3.bf16.msra.mxu1 %v2115_v56  ;;  %v2204_v55 = vld [vmem:[#allocation4 + $0xd8] ss:$12 sps:$4 sm:$0xff]  }
  0x64   :  { %515 = vmatprep.subr.bf16.mxu0 %v2118_v57  ;;  %2002 = vmatprep.subr.bf16.mxu1 %v2346_v38  ;;  %v2207_v56 = vld [vmem:[#allocation4 + $0x258] ss:$12 sps:$4 sm:$0xff]  }
  0x65   :  { %v2212_v57 = vld [vmem:[#allocation4 + $0xc4] ss:$12 sps:$4 sm:$0xff]  }
  0x67   :  { %516 = vmatpush1.bf16.msra.mxu0 %v2116_v58  ;;  %2003 = vmatpush3.bf16.msra.mxu1 %v2119_v59  ;;  %v2215_v58 = vld [vmem:[#allocation4 + $0x244] ss:$12 sps:$4 sm:$0xff]   ;;  %v2210_v59 = vld [vmem:[#allocation4 + $0xc0] ss:$12 sps:$4 sm:$0xff]  }
  0x68   :  { %1255 = vmatprep.subr.bf16.mxu0 %v2122_v60  ;;  %1296 = vmatprep.subr.bf16.mxu1 %v2125_v61  ;;  %v2213_v60 = vld [vmem:[#allocation4 + $0x240] ss:$12 sps:$4 sm:$0xff]   ;;  %v2216_v61 = vld [vmem:[#allocation4 + $0x170] ss:$12 sps:$4 sm:$0xff]  }
  0x6a   :  { %534 = vmatmul.mubr.bf16.vlgmr.msra.gmra.mxu0 %v2392_v35  ;;  %2005 = vmatmul.mubr.bf16.vlgmr.msra.gmra.mxu1 %v2392_v35  ;;  %v2177_v35 = vld [vmem:[#allocation4 + $0x2d0] ss:$12 sps:$4 sm:$0xff]  }
  0x6b   :  { %1256 = vmatpush1.bf16.msra.mxu0 %v2120_v62  ;;  %1297 = vmatpush1.bf16.msra.mxu1 %v2123_v63  ;;  %v2217_v62 = vld [vmem:[#allocation4 + $0x2f0] ss:$12 sps:$4 sm:$0xff]   ;;  %v583_v63 = vlaneseq }
  0x6c   :  { %1257 = vmatprep.subr.bf16.mxu0 %v2128_v0  ;;  %1298 = vmatprep.subr.bf16.mxu1 %v2131_v1 }
  0x6d   :  { %v2409_v0 = vshrl.u32 %v583_v63, 7  ;;  %v2246_v63 = vld [vmem:[#allocation4 + $0x8] ss:$12 sps:$4 sm:$0xff]  }
  0x6f   :  { %1258 = vmatpush1.bf16.msra.mxu0 %v2126_v2  ;;  %1299 = vmatpush1.bf16.msra.mxu1 %v2129_v3  ;;  %v585_v1 = vsub.s32 0, %v2409_v0  ;;  %v593_v2 = vsub.s32 2, %v2409_v0  ;;  %v62_v3 = vld [vmem:[%s2470_s4] sm:$0xf] }
  0x70   :  { %1259 = vmatprep.subr.bf16.mxu0 %v2134_v4  ;;  %1300 = vmatprep.subr.bf16.mxu1 %v2137_v5  ;;  %v589_v4 = vsub.s32 1, %v2409_v0  ;;  %v597_v5 = vsub.s32 3, %v2409_v0 }
  0x73   :  { %1260 = vmatpush1.bf16.msra.mxu0 %v2132_v6  ;;  %1301 = vmatpush1.bf16.msra.mxu1 %v2135_v7  ;;  %v586_v6 = vrot.slane %v62_v3, %v585_v1  ;;  %v594_v7 = vrot.slane %v62_v3, %v593_v2 }
  0x74   :  { %1261 = vmatprep.subr.bf16.mxu0 %v2140_v8  ;;  %1302 = vmatprep.subr.bf16.mxu1 %v2143_v9  ;;  %v590_v8 = vrot.slane %v62_v3, %v589_v4  ;;  %v598_v9 = vrot.slane %v62_v3, %v597_v5  ;;  %v2247_v3 = vld [vmem:[#allocation4 + $0x188] ss:$12 sps:$4 sm:$0xff]  }
  0x77   :  { %1262 = vmatpush1.bf16.msra.mxu0 %v2138_v10  ;;  %1303 = vmatpush1.bf16.msra.mxu1 %v2141_v11 }
  0x78   :  { %1263 = vmatprep.subr.bf16.mxu0 %v2146_v12  ;;  %1304 = vmatprep.subr.bf16.mxu1 %v2149_v13 }
  0x7b   :  { %1264 = vmatpush1.bf16.msra.mxu0 %v2144_v14  ;;  %1305 = vmatpush1.bf16.msra.mxu1 %v2147_v15 }
  0x7c   :  { %1265 = vmatprep.subr.bf16.mxu0 %v2152_v16  ;;  %1306 = vmatprep.subr.bf16.mxu1 %v2155_v17 }
  0x7f   :  { %1266 = vmatpush1.bf16.msra.mxu0 %v2150_v18  ;;  %1307 = vmatpush1.bf16.msra.mxu1 %v2153_v19 }
  0x80   :  { %1267 = vmatprep.subr.bf16.mxu0 %v2158_v20  ;;  %1308 = vmatprep.subr.bf16.mxu1 %v2161_v21 }
  0x83   :  { %1268 = vmatpush1.bf16.msra.mxu0 %v2156_v22  ;;  %1309 = vmatpush1.bf16.msra.mxu1 %v2159_v23 }
  0x84   :  { %1269 = vmatprep.subr.bf16.mxu0 %v2164_v24  ;;  %1310 = vmatprep.subr.bf16.mxu1 %v2167_v25 }
  0x87   :  { %1270 = vmatpush1.bf16.msra.mxu0 %v2162_v26  ;;  %1311 = vmatpush1.bf16.msra.mxu1 %v2165_v27 }
  0x88   :  { %1271 = vmatprep.subr.bf16.mxu0 %v2170_v28  ;;  %1312 = vmatprep.subr.bf16.mxu1 %v2173_v29  ;;  %v2218_v29 = vld [vmem:[#allocation4 + $0xb0] ss:$12 sps:$4 sm:$0xff]  }
  0x8b   :  { %1272 = vmatpush2.bf16.msra.mxu0 %v2168_v30  ;;  %1313 = vmatpush2.bf16.msra.mxu1 %v2171_v31  ;;  %v2219_v30 = vld [vmem:[#allocation4 + $0x230] ss:$12 sps:$4 sm:$0xff]  }
  0x8c   :  { %1273 = vmatprep.subr.bf16.mxu0 %v2176_v32  ;;  %1314 = vmatprep.subr.bf16.mxu1 %v2179_v33  ;;  %v2220_v32 = vld [vmem:[#allocation4 + $0x158] ss:$12 sps:$4 sm:$0xff]  }
  0x8d   :  { %v2221_v33 = vld [vmem:[#allocation4 + $0x2d8] ss:$12 sps:$4 sm:$0xff]  }
  0x8f   :  { %1274 = vmatpush2.bf16.msra.mxu0 %v2174_v34  ;;  %1315 = vmatpush2.bf16.msra.mxu1 %v2177_v35  ;;  %v2222_v34 = vld [vmem:[#allocation4 + $0x98] ss:$12 sps:$4 sm:$0xff]  }
  0x90   :  { %1275 = vmatprep.subr.bf16.mxu0 %v2182_v36  ;;  %1316 = vmatprep.subr.bf16.mxu1 %v2185_v37  ;;  %v2223_v35 = vld [vmem:[#allocation4 + $0x218] ss:$12 sps:$4 sm:$0xff]   ;;  %v2224_v36 = vld [vmem:[#allocation4 + $0x140] ss:$12 sps:$4 sm:$0xff]  }
  0x91   :  { %v2225_v37 = vld [vmem:[#allocation4 + $0x2c0] ss:$12 sps:$4 sm:$0xff]  }
  0x93   :  { %1276 = vmatpush2.bf16.msra.mxu0 %v2180_v39  ;;  %1317 = vmatpush2.bf16.msra.mxu1 %v2183_v40  ;;  %v2226_v39 = vld [vmem:[#allocation4 + $0x80] ss:$12 sps:$4 sm:$0xff]  }
  0x94   :  { %1277 = vmatprep.subr.bf16.mxu0 %v2188_v41  ;;  %1318 = vmatprep.subr.bf16.mxu1 %v2191_v42  ;;  %v2227_v40 = vld [vmem:[#allocation4 + $0x200] ss:$12 sps:$4 sm:$0xff]   ;;  %v2228_v41 = vld [vmem:[#allocation4 + $0x128] ss:$12 sps:$4 sm:$0xff]  }
  0x95   :  { %v2229_v42 = vld [vmem:[#allocation4 + $0x2a8] ss:$12 sps:$4 sm:$0xff]  }
  0x97   :  { %1278 = vmatpush2.bf16.msra.mxu0 %v2186_v43  ;;  %1319 = vmatpush2.bf16.msra.mxu1 %v2189_v44  ;;  %v2230_v43 = vld [vmem:[#allocation4 + $0x68] ss:$12 sps:$4 sm:$0xff]  }
  0x98   :  { %1279 = vmatprep.subr.bf16.mxu0 %v2194_v45  ;;  %1320 = vmatprep.subr.bf16.mxu1 %v2197_v46  ;;  %v2231_v44 = vld [vmem:[#allocation4 + $0x1e8] ss:$12 sps:$4 sm:$0xff]   ;;  %v2232_v45 = vld [vmem:[#allocation4 + $0x110] ss:$12 sps:$4 sm:$0xff]  }
  0x99   :  { %v2233_v46 = vld [vmem:[#allocation4 + $0x290] ss:$12 sps:$4 sm:$0xff]  }
  0x9b   :  { %1280 = vmatpush2.bf16.msra.mxu0 %v2192_v47  ;;  %1321 = vmatpush2.bf16.msra.mxu1 %v2195_v48  ;;  %v2234_v47 = vld [vmem:[#allocation4 + $0x50] ss:$12 sps:$4 sm:$0xff]  }
  0x9c   :  { %1281 = vmatprep.subr.bf16.mxu0 %v2200_v49  ;;  %1322 = vmatprep.subr.bf16.mxu1 %v2203_v50  ;;  %v2235_v48 = vld [vmem:[#allocation4 + $0x1d0] ss:$12 sps:$4 sm:$0xff]   ;;  %v2236_v49 = vld [vmem:[#allocation4 + $0xf8] ss:$12 sps:$4 sm:$0xff]  }
  0x9d   :  { %v2237_v50 = vld [vmem:[#allocation4 + $0x278] ss:$12 sps:$4 sm:$0xff]  }
  0x9f   :  { %1282 = vmatpush2.bf16.msra.mxu0 %v2198_v51  ;;  %1323 = vmatpush2.bf16.msra.mxu1 %v2201_v52  ;;  %v2238_v51 = vld [vmem:[#allocation4 + $0x38] ss:$12 sps:$4 sm:$0xff]  }
  0xa0   :  { %1283 = vmatprep.subr.bf16.mxu0 %v2206_v53  ;;  %1324 = vmatprep.subr.bf16.mxu1 %v2209_v54  ;;  %v2239_v52 = vld [vmem:[#allocation4 + $0x1b8] ss:$12 sps:$4 sm:$0xff]   ;;  %v2240_v53 = vld [vmem:[#allocation4 + $0xe0] ss:$12 sps:$4 sm:$0xff]  }
  0xa1   :  { %v2241_v54 = vld [vmem:[#allocation4 + $0x260] ss:$12 sps:$4 sm:$0xff]  }
  0xa3   :  { %1284 = vmatpush2.bf16.msra.mxu0 %v2204_v55  ;;  %1325 = vmatpush2.bf16.msra.mxu1 %v2207_v56  ;;  %v2242_v55 = vld [vmem:[#allocation4 + $0x20] ss:$12 sps:$4 sm:$0xff]  }
  0xa4   :  { %1285 = vmatprep.subr.bf16.mxu0 %v2212_v57  ;;  %1326 = vmatprep.subr.bf16.mxu1 %v2215_v58  ;;  %v2243_v56 = vld [vmem:[#allocation4 + $0x1a0] ss:$12 sps:$4 sm:$0xff]   ;;  %v2244_v57 = vld [vmem:[#allocation4 + $0xc8] ss:$12 sps:$4 sm:$0xff]  }
  0xa5   :  { %v2245_v58 = vld [vmem:[#allocation4 + $0x248] ss:$12 sps:$4 sm:$0xff]  }
  0xa7   :  { %1286 = vmatpush2.bf16.msra.mxu0 %v2210_v59  ;;  %1327 = vmatpush2.bf16.msra.mxu1 %v2213_v60 }
  0xa8   :  { %1913 = vmatprep.subr.bf16.mxu0 %v2216_v61  ;;  %1935 = vmatprep.subr.bf16.mxu1 %v2217_v62 }
 0x10a   :  { %v453_v10 = vpop.f32.mrf.mxu0  ;;  %v494_v11 = vpop.f32.mrf.mxu1 }
 0x10b   :  { %v603_v12 = vadd.f32 %v586_v6, %v453_v10  ;;  %v605_v13 = vadd.f32 %v594_v7, %v494_v11  ;;  %v2248_v7 = vld [vmem:[#allocation6 + $0x78] sm:$0xff]   ;;  %v2250_v11 = vld [vmem:[#allocation6 + $0x70] sm:$0xff]  }
 0x10c   :  { %v455_v14 = vpop.f32.mrf.mxu0  ;;  %v496_v15 = vpop.f32.mrf.mxu1  ;;  %v2249_v10 = vld [vmem:[#allocation6 + $0x38] sm:$0xff]  }
 0x10d   :  { %v609_v16 = vmax.f32 %v605_v13, 0.0  ;;  %v604_v17 = vadd.f32 %v590_v8, %v455_v14  ;;  %v606_v18 = vadd.f32 %v598_v9, %v496_v15  ;;  %v607_v19 = vmax.f32 %v603_v12, 0.0  ;;  %v2251_v12 = vld [vmem:[#allocation6 + $0x30] sm:$0xff]   ;;  %v2252_v13 = vld [vmem:[#allocation6 + $0x68] sm:$0xff]   ;;  %v2254_v15 = vld [vmem:[#allocation6 + $0x60] sm:$0xff]  }
 0x10e   :  { %v457_v20 = vpop.f32.mrf.mxu0  ;;  %v498_v21 = vpop.f32.mrf.mxu1  ;;  %v2253_v14 = vld [vmem:[#allocation6 + $0x28] sm:$0xff]  }
 0x10f   :  { %v608_v22 = vmax.f32 %v604_v17, 0.0  ;;  %v610_v23 = vmax.f32 %v606_v18, 0.0  ;;  %v2424_v24 = vpack.c.bf16 %v609_v16, %v609_v16  ;;  %v2426_v31 = vpack.c.bf16 %v607_v19, %v607_v19  ;;  %v2255_v16 = vld [vmem:[#allocation6 + $0x20] sm:$0xff]   ;;  %v2256_v17 = vld [vmem:[#allocation6 + $0x58] sm:$0xff]   ;;  %v2258_v19 = vld [vmem:[#allocation6 + $0x50] sm:$0xff]  }
 0x110   :  { %v458_v25 = vpop.f32.mrf.mxu0  ;;  %v499_v26 = vpop.f32.mrf.mxu1  ;;  %v2257_v18 = vld [vmem:[#allocation6 + $0x18] sm:$0xff]   ;;  %v2259_v20 = vld [vmem:[#allocation6 + $0x10] sm:$0xff]   ;;  %v2260_v21 = vld [vmem:[#allocation6 + $0x48] sm:$0xff]  }
 0x111   :  { %v612_v27 = vpack.c.bf16 %v608_v22, %v608_v22  ;;  %v614_v28 = vpack.c.bf16 %v610_v23, %v610_v23  ;;  %v2261_v22 = vld [vmem:[#allocation6 + $0x8] sm:$0xff]   ;;  %v2262_v23 = vld [vmem:[#allocation6 + $0x40] sm:$0xff]   ;;  %v2264_v25 = vld [vmem:[#allocation6 + $0xb8] sm:$0xff]  }
 0x112   :  { %v2265_v26 = vld [vmem:[#allocation6 + $0xb0] sm:$0xff]  }
 0x113   :  { %1287 = vmatprep.mubr.bf16.mxu0 %v612_v27  ;;  %1328 = vmatprep.mubr.bf16.mxu1 %v614_v28 }
 0x114   :  { %1288 = vmatmul.mubr.bf16.vlgmr.msra.gmra.mxu0 %v2426_v31  ;;  %1329 = vmatmul.mubr.bf16.vlgmr.msra.gmra.mxu1 %v2424_v24 }
 0x115   :  { %1914 = vmatpush3.bf16.msra.mxu0 %v2218_v29  ;;  %1936 = vmatpush3.bf16.msra.mxu1 %v2219_v30  ;;  %v2268_v29 = vld [vmem:[#allocation6 + $0x98] sm:$0xff]   ;;  %v2269_v30 = vld [vmem:[#allocation6 + $0x90] sm:$0xff]  }
 0x116   :  { %1369 = vmatprep.mubr.bf16.mxu0 %v612_v27  ;;  %1409 = vmatprep.mubr.bf16.mxu1 %v614_v28  ;;  %v2266_v27 = vld [vmem:[#allocation6 + $0xa8] sm:$0xff]   ;;  %v2267_v28 = vld [vmem:[#allocation6 + $0xa0] sm:$0xff]  }
 0x117   :  { %1915 = vmatprep.subr.bf16.mxu0 %v2220_v32  ;;  %1937 = vmatprep.subr.bf16.mxu1 %v2221_v33  ;;  %v2271_v32 = vld [vmem:[#allocation6 + $0x80] sm:$0xff]  }
 0x118   :  { %v63_v33 = vld [vmem:[%s2470_s4 + $0x4] sm:$0x7] }
 0x119   :  { %1916 = vmatpush3.bf16.msra.mxu0 %v2222_v34  ;;  %1938 = vmatpush3.bf16.msra.mxu1 %v2223_v35 }
 0x11a   :  { %1917 = vmatprep.subr.bf16.mxu0 %v2224_v36  ;;  %1939 = vmatprep.subr.bf16.mxu1 %v2225_v37  ;;  %v1421_v37 = vrot.slane %v63_v33, %v585_v1 }
 0x11d   :  { %1918 = vmatpush3.bf16.msra.mxu0 %v2226_v39  ;;  %1940 = vmatpush3.bf16.msra.mxu1 %v2227_v40 }
 0x11e   :  { %1919 = vmatprep.subr.bf16.mxu0 %v2228_v41  ;;  %1941 = vmatprep.subr.bf16.mxu1 %v2229_v42 }
 0x121   :  { %1920 = vmatpush3.bf16.msra.mxu0 %v2230_v43  ;;  %1942 = vmatpush3.bf16.msra.mxu1 %v2231_v44 }
 0x122   :  { %1921 = vmatprep.subr.bf16.mxu0 %v2232_v45  ;;  %1943 = vmatprep.subr.bf16.mxu1 %v2233_v46 }
 0x125   :  { %1922 = vmatpush3.bf16.msra.mxu0 %v2234_v47  ;;  %1944 = vmatpush3.bf16.msra.mxu1 %v2235_v48 }
 0x126   :  { %1923 = vmatprep.subr.bf16.mxu0 %v2236_v49  ;;  %1945 = vmatprep.subr.bf16.mxu1 %v2237_v50 }
 0x129   :  { %1924 = vmatpush3.bf16.msra.mxu0 %v2238_v51  ;;  %1946 = vmatpush3.bf16.msra.mxu1 %v2239_v52 }
 0x12a   :  { %1925 = vmatprep.subr.bf16.mxu0 %v2240_v53  ;;  %1947 = vmatprep.subr.bf16.mxu1 %v2241_v54  ;;  %v2430_v59 = vpop.f32.mrf.mxu0  ;;  %v2432_v60 = vpop.f32.mrf.mxu1 }
 0x12c   :  { %v2434_v61 = vpop.f32.mrf.mxu0  ;;  %v2006_v62 = vpop.f32.mrf.mxu1 }
 0x12d   :  { %1926 = vmatpush3.bf16.msra.mxu0 %v2242_v55  ;;  %1948 = vmatpush3.bf16.msra.mxu1 %v2243_v56  ;;  %v1429_v62 = vrot.slane %v63_v33, %v593_v2 }
 0x12e   :  { %1927 = vmatprep.subr.bf16.mxu0 %v2244_v57  ;;  %1949 = vmatprep.subr.bf16.mxu1 %v2245_v58  ;;  %v539_v5 = vpop.f32.mrf.mxu0  ;;  %v579_v6 = vpop.f32.mrf.mxu1 }
 0x130   :  { %v540_v8 = vpop.f32.mrf.mxu0  ;;  %v2007_v9 = vpop.f32.mrf.mxu1 }
 0x131   :  { %1928 = vmatpush3.bf16.msra.mxu0 %v2246_v63  ;;  %1950 = vmatpush3.bf16.msra.mxu1 %v2247_v3 }
 0x132   :  { %1957 = vmatprep.subr.bf16.mxu0 %v2248_v7  ;;  %2008 = vmatprep.subr.bf16.mxu1 %v2346_v38 }
 0x134   :  { %1370 = vmatmul.mubr.bf16.vlgmr.msra.gmra.mxu0 %v2426_v31  ;;  %1410 = vmatmul.mubr.bf16.vlgmr.msra.gmra.mxu1 %v2424_v24  ;;  %v2263_v24 = vld [vmem:[#allocation6] sm:$0xff]   ;;  %v2270_v31 = vld [vmem:[#allocation6 + $0x88] sm:$0xff]  }
 0x135   :  { %1958 = vmatpush3.bf16.msra.mxu0 %v2249_v10  ;;  %2024 = vmatprep.mubr.msk.bf16.mxu1 %vm2347_vm0, %v2346_v38 }
 0x136   :  { %1959 = vmatprep.subr.bf16.mxu0 %v2250_v11  ;;  %2009 = vmatpush3.bf16.msra.mxu1 %v2264_v25 }
 0x137   :  { %2010 = vmatprep.subr.bf16.mxu1 %v2346_v38 }
 0x139   :  { %1960 = vmatpush3.bf16.msra.mxu0 %v2251_v12 }
 0x13a   :  { %1961 = vmatprep.subr.bf16.mxu0 %v2252_v13  ;;  %2011 = vmatpush3.bf16.msra.mxu1 %v2265_v26 }
 0x13b   :  { %2012 = vmatprep.subr.bf16.mxu1 %v2346_v38 }
 0x13d   :  { %1962 = vmatpush3.bf16.msra.mxu0 %v2253_v14 }
 0x13e   :  { %1963 = vmatprep.subr.bf16.mxu0 %v2254_v15  ;;  %2013 = vmatpush3.bf16.msra.mxu1 %v2266_v27 }
 0x13f   :  { %2014 = vmatprep.subr.bf16.mxu1 %v2346_v38 }
 0x141   :  { %1964 = vmatpush3.bf16.msra.mxu0 %v2255_v16 }
 0x142   :  { %1965 = vmatprep.subr.bf16.mxu0 %v2256_v17  ;;  %2015 = vmatpush3.bf16.msra.mxu1 %v2267_v28 }
 0x143   :  { %2016 = vmatprep.subr.bf16.mxu1 %v2346_v38 }
 0x145   :  { %1966 = vmatpush3.bf16.msra.mxu0 %v2257_v18 }
 0x146   :  { %1967 = vmatprep.subr.bf16.mxu0 %v2258_v19  ;;  %2017 = vmatpush3.bf16.msra.mxu1 %v2268_v29 }
 0x147   :  { %2018 = vmatprep.subr.bf16.mxu1 %v2346_v38 }
 0x149   :  { %1968 = vmatpush3.bf16.msra.mxu0 %v2259_v20 }
 0x14a   :  { %1969 = vmatprep.subr.bf16.mxu0 %v2260_v21  ;;  %2019 = vmatpush3.bf16.msra.mxu1 %v2269_v30 }
 0x14b   :  { %2020 = vmatprep.subr.bf16.mxu1 %v2346_v38 }
 0x14d   :  { %1970 = vmatpush3.bf16.msra.mxu0 %v2261_v22 }
 0x14e   :  { %1971 = vmatprep.subr.bf16.mxu0 %v2262_v23  ;;  %2021 = vmatpush3.bf16.msra.mxu1 %v2270_v31 }
 0x14f   :  { %2022 = vmatprep.subr.bf16.mxu1 %v2346_v38  ;;  %v1425_v38 = vrot.slane %v63_v33, %v589_v4 }
 0x151   :  { %1972 = vmatpush3.bf16.msra.mxu0 %v2263_v24 }
 0x152   :  { %2023 = vmatpush3.bf16.msra.mxu1 %v2271_v32 }
 0x1d4   :  { %v1289_v34 = vpop.f32.mrf.mxu0  ;;  %v1330_v35 = vpop.f32.mrf.mxu1 }
 0x1d5   :  { %v1290_v36 = vadd.f32 %v1289_v34, %v2430_v59 }
 0x1d6   :  { %v1291_v39 = vpop.f32.mrf.mxu0  ;;  %v1332_v40 = vpop.f32.mrf.mxu1 }
 0x1d7   :  { %v1331_v41 = vadd.f32 %v1330_v35, %v1290_v36  ;;  %v1292_v42 = vadd.f32 %v1291_v39, %v2434_v61 }
 0x1d8   :  { %v1293_v43 = vpop.f32.mrf.mxu0  ;;  %v1334_v44 = vpop.f32.mrf.mxu1 }
 0x1d9   :  { %v1433_v45 = vadd.f32 %v1421_v37, %v1331_v41  ;;  %v1333_v46 = vadd.f32 %v1332_v40, %v1292_v42 }
 0x1da   :  { %v1294_v47 = vpop.f32.mrf.mxu0  ;;  %v1335_v48 = vpop.f32.mrf.mxu1 }
 0x1db   :  { %v1434_v49 = vadd.f32 %v1425_v38, %v1333_v46  ;;  %v1436_v50 = vmax.f32 %v1433_v45, 0.0 }
 0x1dd   :  { %v1437_v51 = vmax.f32 %v1434_v49, 0.0  ;;  %v1439_v53 = vpack.c.bf16 %v1436_v50, %v1436_v50 }
 0x1df   :  { %v1440_v52 = vpack.c.bf16 %v1437_v51, %v1437_v51 }
 0x1e1   :  { %1672 = vmatprep.mubr.bf16.mxu0 %v1440_v52 }
 0x1e2   :  { %1673 = vmatmul.mubr.bf16.vlgmr.msra.gmra.mxu0 %v1439_v53 }
 0x1f4   :  { %v1929_v1 = vpop.f32.mrf.mxu0  ;;  %v1951_v54 = vpop.f32.mrf.mxu1 }
 0x1f6   :  { %v1930_v55 = vpop.f32.mrf.mxu0  ;;  %v1952_v56 = vpop.f32.mrf.mxu1 }
 0x1f7   :  { %v1931_v57 = vadd.f32 %v1930_v55, %v1929_v1  ;;  %v1953_v61 = vadd.f32 %v1952_v56, %v1951_v54 }
 0x1f8   :  { %v1932_v58 = vpop.f32.mrf.mxu0  ;;  %v1954_v4 = vpop.f32.mrf.mxu1 }
 0x1f9   :  { %v1372_v59 = vadd.f32 %v1931_v57, %v2432_v60  ;;  %v1879_v60 = vld [vmem:[%s2470_s4 + $0x7] ss:$0 sm:$0xff] }
 0x1fa   :  { %v1933_v63 = vpop.f32.mrf.mxu0  ;;  %v1955_v3 = vpop.f32.mrf.mxu1 }
 0x1fb   :  { %v1412_v5 = vadd.f32 %v1953_v61, %v1372_v59 }
 0x1fd   :  { %v1435_v6 = vadd.f32 %v1429_v62, %v1412_v5 }
 0x1ff   :  { %v1438_v7 = vmax.f32 %v1435_v6, 0.0 }
 0x201   :  { %v1441_v8 = vpack.c.bf16 %v1438_v7, %v1438_v7 }
 0x203   :  { %2025 = vmatmul.mubr.bf16.vlgmr.msra.gmra.mxu1 %v1441_v8 }
 0x2a2   :  { %v1973_v9 = vpop.f32.mrf.mxu0 }
 0x2a4   :  { %v1974_v10 = vpop.f32.mrf.mxu0 }
 0x2a5   :  { %v1975_v13 = vadd.f32 %v1974_v10, %v1973_v9 }
 0x2a6   :  { %v1976_v11 = vpop.f32.mrf.mxu0 }
 0x2a7   :  { %v1675_v14 = vadd.f32 %v1975_v13, %v1879_v60 }
 0x2a8   :  { %v1977_v12 = vpop.f32.mrf.mxu0 }
 0x2c3   :  { %v1714_v15 = vpop.f32.mrf.mxu1 }
 0x2c4   :  { %v1715_v0 = vadd.f32 %v1714_v15, %v1675_v14 }
 0x2c5   :  { %v2026_v2 = vpop.f32.mrf.mxu1 }
 0x2c6   :  { %1720 = vst [vmem:[%s2471_s5] sm:$0xff] %v1715_v0 }
 0x2c7   :  { %v1717_v16 = vpop.f32.mrf.mxu1 }
 0x2c9   :  { %v2027_v17 = vpop.f32.mrf.mxu1 }
 0x2ca   :  { %1725 = vsyncpa [#allocation3], 1 }
 0x2cb   :  { %1726 = vsyncpa [#allocation5], 1 }

</bundles_post_ra>
